<compile_context>
chip_gen: v7x
topology: tpu7x:2x2x1
jax: 0.10.0
libtpu: 0.0.40
codegen_flags: <defaults>
</compile_context>

<pallas_src>
import jax
import jax.numpy as jnp
import numpy as np
from jax import lax
from jax.experimental import pallas as pl
from jax.experimental.pallas import tpu as pltpu


def _coord_conv_kernel(x_ref, w_ref, bt_ref, o_ref):
    # x_ref : (1, K, Mt)    im2col'd image-channel patches, M (=Ho*Wo tile) on lanes
    # w_ref : (Cout, K)     fused weight slab (image channels only), K = KH*KW*C
    # bt_ref: (Cout, Mt) f32 conv bias + folded coord-channel contribution
    # o_ref : (1, Cout, Mt) lane-dense output slab
    acc = jnp.dot(w_ref[...], x_ref[0], preferred_element_type=jnp.float32)
    o_ref[0] = (acc + bt_ref[...]).astype(o_ref.dtype)


def _pick_m_tile(M, N):
    """Lane-dense M tile: multiple of 128 dividing M, keeping >=4 grid steps when possible."""
    if M % 128 != 0:
        return M  # ragged spatial size: single (masked-store) tile; still correct
    cap = min(M, 2048)
    best = 128
    cand = 128
    while cand <= cap:
        if M % cand == 0 and (M // cand) * N >= 4:
            best = cand
        cand += 128
    return best


def coord_conv2d(x, weight, bias=None, *, stride=1, padding=0, dilation=1,
                 compute_dtype=None):
    """CoordConv2d forward. x: (N,C,H,W); weight: (Cout, C+2, KH, KW); bias: (Cout,) or None."""
    N, C, H, W = x.shape
    # The reference module's affine_grid(...).transpose(1, 3) only type-checks for H == W.
    assert H == W, "CoordConv2d reference requires square inputs"
    Cout, Cin_aug, KH, KW = weight.shape
    assert Cin_aug == C + 2
    # TODO(synk): groups > 1 of the original nn.Conv2d is not implemented.

    H_out = (H + 2 * padding - dilation * (KH - 1) - 1) // stride + 1
    W_out = (W + 2 * padding - dilation * (KW - 1) - 1) // stride + 1
    M = H_out * W_out
    K = KH * KW * C
    # On v6e/v7x pass compute_dtype=jnp.bfloat16 (MXU-native); accumulation stays f32.
    dt = compute_dtype if compute_dtype is not None else x.dtype

    bias_f32 = (jnp.zeros((Cout,), jnp.float32) if bias is None
                else bias.astype(jnp.float32))

    def _tap_windows(arr):
        # arr: (..., Hp, Wp) -> list over KH*KW taps of (..., H_out, W_out) views
        outs = []
        for kh in range(KH):
            for kw in range(KW):
                h0, w0 = kh * dilation, kw * dilation
                outs.append(arr[..., h0:h0 + stride * (H_out - 1) + 1:stride,
                                 w0:w0 + stride * (W_out - 1) + 1:stride])
        return outs

    # ---- coord channels -> per-position bias (batch-independent, tiny matmul) ----
    # F.affine_grid(identity, align_corners=False) gives (2k+1)/S - 1 at index k;
    # after transpose(1, 3): channel 0 varies along H, channel 1 varies along W,
    # and the module concatenates [coords, x] (coords first).
    lin = (2.0 * jnp.arange(H, dtype=jnp.float32) + 1.0) / H - 1.0
    coord = jnp.stack([jnp.broadcast_to(lin[:, None], (H, W)),
                       jnp.broadcast_to(lin[None, :], (H, W))], axis=0)        # (2,H,W)
    coord_pad = jnp.pad(coord, ((0, 0), (padding, padding), (padding, padding)))
    coord_cols = jnp.stack(_tap_windows(coord_pad), axis=0).reshape(KH * KW * 2, M)
    wc = weight[:, :2].astype(jnp.float32).transpose(0, 2, 3, 1).reshape(Cout, KH * KW * 2)
    bias_t = (jnp.dot(wc, coord_cols, precision=lax.Precision.HIGHEST)
              + bias_f32[:, None])                                             # (Cout, M) f32

    # ---- image channels: single-pass pad + im2col to (N, K, M), M on lanes ----
    x_pad = jnp.pad(x, ((0, 0), (0, 0), (padding, padding), (padding, padding)))
    taps = _tap_windows(x_pad)                                   # each (N, C, Ho, Wo)
    patches = jnp.stack(taps, axis=1).reshape(N, K, M).astype(dt)  # K index = tap*C + c

    # ---- fused weight slab, matching K ordering (tap-major, then channel) ----
    w_img = weight[:, 2:].astype(dt).transpose(0, 2, 3, 1).reshape(Cout, K)   # (Cout, K)

    Mt = _pick_m_tile(M, N)
    grid = (N, pl.cdiv(M, Mt))

    out = pl.pallas_call(
        _coord_conv_kernel,
        out_shape=jax.ShapeDtypeStruct((N, Cout, M), x.dtype),
        grid_spec=pltpu.PrefetchScalarGridSpec(
            num_scalar_prefetch=0,
            grid=grid,
            in_specs=[
                pl.BlockSpec((1, K, Mt), lambda n, m: (n, 0, m)),
                # Constant-index blocks: DMA'd once, resident across all grid steps.
                pl.BlockSpec((Cout, K), lambda n, m: (0, 0)),
                pl.BlockSpec((Cout, Mt), lambda n, m: (0, m)),
            ],
            out_specs=pl.BlockSpec((1, Cout, Mt), lambda n, m: (n, 0, m)),
        ),
        compiler_params=pltpu.CompilerParams(
            dimension_semantics=("parallel", "parallel"),
            vmem_limit_bytes=32 * 1024 * 1024,   # safe on v7x's 64 MiB VMEM as well
        ),
    )(patches, w_img, bias_t)

    # (N, Cout, Ho*Wo) -> NCHW is a free row-major reshape (no HBM transpose).
    return out.reshape(N, Cout, H_out, W_out)


if __name__ == "__main__":
    # Small deterministic config: batch=2, in_channels=4, H=W=16,
    # out_channels=8, kernel_size=3, stride=1, padding=1, bias=True.
    N, C, HW = 2, 4, 16
    Cout, KS = 8, 3
    key = jax.random.PRNGKey(0)
    kx, kw_, kb = jax.random.split(key, 3)
    x = jax.random.normal(kx, (N, C, HW, HW), dtype=jnp.float32)
    weight = jax.random.normal(kw_, (Cout, C + 2, KS, KS), dtype=jnp.float32) * 0.1
    bias = jax.random.normal(kb, (Cout,), dtype=jnp.float32) * 0.1

    y = coord_conv2d(x, weight, bias, stride=1, padding=1)
    y = jax.block_until_ready(y)

    # Reference: high-precision XLA conv on the explicitly coord-augmented input.
    lin = (2.0 * jnp.arange(HW, dtype=jnp.float32) + 1.0) / HW - 1.0
    coord = jnp.stack([jnp.broadcast_to(lin[:, None], (HW, HW)),
                       jnp.broadcast_to(lin[None, :], (HW, HW))], axis=0)
    x_aug = jnp.concatenate([jnp.broadcast_to(coord[None], (N, 2, HW, HW)), x], axis=1)
    y_ref = lax.conv_general_dilated(
        x_aug, weight, window_strides=(1, 1), padding=((1, 1), (1, 1)),
        dimension_numbers=("NCHW", "OIHW", "NCHW"),
        precision=lax.Precision.HIGHEST) + bias[None, :, None, None]
    np.testing.assert_allclose(np.asarray(y), np.asarray(y_ref), rtol=1e-3, atol=1e-3)

    assert y.shape == (N, Cout, HW, HW)
    print("KERNEL_OK")
</pallas_src>

<mosaic_0001>
module attributes {stable_mosaic.version = 11 : i64} {
  func.func @_coord_conv_kernel(%arg0: i32, %arg1: i32, %arg2: memref<1x36x128xf32, #tpu.memory_space<vmem>>, %arg3: memref<8x36xf32, #tpu.memory_space<vmem>>, %arg4: memref<8x128xf32, #tpu.memory_space<vmem>>, %arg5: memref<1x8x128xf32, #tpu.memory_space<vmem>>) attributes {dimension_semantics = [#tpu.dimension_semantics<parallel>, #tpu.dimension_semantics<parallel>], iteration_bounds = array<i64: 2, 2>, scalar_prefetch = 0 : i64, scratch_operands = 0 : i64, tpu.core_type = #tpu.core_type<tc>, window_params = [{transform_indices = @transform_0, window_bounds = array<i64: 1, 36, 128>}, {pipeline_mode = #tpu.pipeline_mode<synchronous>, transform_indices = @transform_1, window_bounds = array<i64: 8, 36>}, {transform_indices = @transform_2, window_bounds = array<i64: 8, 128>}, {transform_indices = @transform_3, window_bounds = array<i64: 1, 8, 128>}]} {
    %c0 = arith.constant 0 : index
    %c0_0 = arith.constant 0 : index
    %0 = vector.load %arg3[%c0, %c0_0] : memref<8x36xf32, #tpu.memory_space<vmem>>, vector<8x36xf32>
    %c0_1 = arith.constant 0 : index
    %c0_2 = arith.constant 0 : index
    %c0_3 = arith.constant 0 : index
    %1 = vector.load %arg2[%c0_1, %c0_2, %c0_3] : memref<1x36x128xf32, #tpu.memory_space<vmem>>, vector<1x36x128xf32>
    %2 = vector.shape_cast %1 : vector<1x36x128xf32> to vector<36x128xf32>
    %cst = arith.constant dense<0.000000e+00> : vector<8x128xf32>
    %3 = tpu.matmul %0, %2, %cst {dimension_numbers = #tpu.dot_dimension_numbers<[1], [0], [0], [1], [0, 0, 1, 1], [], []>} : vector<8x36xf32>, vector<36x128xf32>, vector<8x128xf32> -> vector<8x128xf32>
    %c0_4 = arith.constant 0 : index
    %c0_5 = arith.constant 0 : index
    %4 = vector.load %arg4[%c0_4, %c0_5] : memref<8x128xf32, #tpu.memory_space<vmem>>, vector<8x128xf32>
    %5 = arith.addf %3, %4 : vector<8x128xf32>
    %c0_6 = arith.constant 0 : index
    %c0_7 = arith.constant 0 : index
    %c0_8 = arith.constant 0 : index
    %6 = vector.load %arg5[%c0_6, %c0_7, %c0_8] : memref<1x8x128xf32, #tpu.memory_space<vmem>>, vector<1x8x128xf32>
    %7 = vector.shape_cast %6 : vector<1x8x128xf32> to vector<8x128xf32>
    %8 = vector.shape_cast %5 : vector<8x128xf32> to vector<1x8x128xf32>
    tpu.vector_store %arg5[%c0_6, %c0_7, %c0_8], %8 {strides = array<i32>} : memref<1x8x128xf32, #tpu.memory_space<vmem>>, vector<1x8x128xf32>,
    return
  }
  func.func @transform_0(%arg0: i32, %arg1: i32) -> (i32, i32, i32) {
    %c0_i32 = arith.constant 0 : i32
    %c0_i32_0 = arith.constant 0 : i32
    return %arg0, %c0_i32, %arg1 : i32, i32, i32
  }
  func.func @transform_1(%arg0: i32, %arg1: i32) -> (i32, i32) {
    %c0_i32 = arith.constant 0 : i32
    %c0_i32_0 = arith.constant 0 : i32
    %c0_i32_1 = arith.constant 0 : i32
    return %c0_i32, %c0_i32_0 : i32, i32
  }
  func.func @transform_2(%arg0: i32, %arg1: i32) -> (i32, i32) {
    %c0_i32 = arith.constant 0 : i32
    %c0_i32_0 = arith.constant 0 : i32
    return %c0_i32, %arg1 : i32, i32
  }
  func.func @transform_3(%arg0: i32, %arg1: i32) -> (i32, i32, i32) {
    %c0_i32 = arith.constant 0 : i32
    %c0_i32_0 = arith.constant 0 : i32
    return %arg0, %c0_i32, %arg1 : i32, i32, i32
  }
}

</mosaic_0001>

<bundles_post_ra>
// kernel: tpu_custom_call.1
= control target key start
LH: loop header
LB: loop body
LE: loop exit
PB: predicated region body
PF: predicated region fallthrough
CT: control target
= control target key end

     0   :  { %s842_s0 = inlined_call_operand.vmem [shape: f32[2,36,256], index: 0, kind: input, shape index: {}]   ;;  %s843_s1 = inlined_call_operand.vmem [shape: f32[8,36], index: 1, kind: input, shape index: {}]   ;;  %s844_s2 = inlined_call_operand.vmem [shape: f32[8,256], index: 2, kind: input, shape index: {}]   ;;  %s845_s3 = inlined_call_operand.hbm [shape: f32[2,8,256], index: 3, kind: output, shape index: {}]  }
   0x1   :  { %846 = sst [smem:[#allocation6_spill]] %s842_s0 }
   0x2   :  { %8 = vsyncpa [#allocation4], 0 }
   0x3   :  { %10 = vsyncpa [#allocation4 + $0x1], 0  ;;  %s685_s12 = smov 0   ;;  %s687_s13 = smov 0  }
   0x4   :  { %s689_s14 = smov 0   ;;  %s691_s15 = smov 0  }
   0x5   :  { %s693_s16 = smov 0   ;;  %s695_s17 = smov 0  }
   0x6   :  { %s697_s18 = smov 0   ;;  %s699_s19 = smov 0  }
   0x7 LB: > { %s448_s20 = sadd.s32 4294967295, %s659_s19   ;;  %s449_s21 = sadd.s32 4294967294, %s659_s19   ;;  %s659_s19 = sphi %s699_s19, %s16_s19   ;;  %s655_s18 = sphi %s697_s18, %s857_s18   ;;  %s651_s17 = sphi %s695_s17, %s856_s17   ;;  %s647_s16 = sphi %s693_s16, %s855_s16   ;;  %s643_s15 = sphi %s691_s15, %s854_s15   ;;  %s639_s14 = sphi %s689_s14, %s853_s14   ;;  %s635_s13 = sphi %s687_s13, %s852_s13   ;;  %s631_s12 = sphi %s685_s12, %s851_s12  }
   0x8   : > { %s25_s22 = sadd.s32 1, %s651_s17  ;;  %s28_s23 = sadd.s32 1, %s655_s18 }
   0x9   : > { %p26_p0 = scmp.ge.s32.totalorder %s25_s22, 2  ;;  %p44_p1 = scmp.ne.s32.totalorder %s639_s14, %s635_s13 }
   0xa   : > { %p45_p2 = scmp.eq.s32.totalorder %s659_s19, 0  ;;  %p123_p5 = scmp.eq.s32.totalorder %s448_s20, 3 }
   0xb   : > { %s859_s22 = smov (%p26_p0, %s25_s22), 0  ;;  %s861_s23 = smov (!%p26_p0, %s28_s23), %s655_s18 }
   0xc   : > { %s33_s24 = ssub.s32 %s651_s17, %s859_s22  ;;  %p737_p3 = por %p45_p2, %p44_p1 }
   0xd   : > { %p30_p4 = scmp.ge.s32.totalorder %s861_s23, 2  ;;  %p128_p6 = scmp.ne.s32.totalorder %s635_s13, %s631_s12 }
   0xe   : > { %p129_p7 = scmp.eq.s32.totalorder %s449_s21, 3  ;;  %p745_p8 = por %p123_p5, %p44_p1 }
   0xf   : > { %s863_s23 = smov (%p30_p4, %s861_s23), 0  ;;  %s37_s30 = sadd.s32 1, %s639_s14 }
  0x10   : > { %p749_p9 = por %p129_p7, %p128_p6  ;;  %s32_s28 = ssub.s32 %s655_s18, %s863_s23 }
  0x11   : > { %s34_s29 = sor.u32 %s33_s24, %s32_s28  ;;  %p451_p11 = scmp.ge.s32.totalorder %s659_s19, 4 }
  0x12   : > { %p35_p10 = scmp.eq.s32.totalorder %s34_s29, 0 }
  0x13   : > { %148 = sbr.rel (%p451_p11) target bundleno = 38 (0x26), region = 20 }
  0x14   : > { %s757_s4 = scalar_select %p35_p10, %s639_s14, %s37_s30  }
  0x1a   : > { %151 = sbr.rel (!%p737_p3) target bundleno = 38 (0x26), region = 24  ;;  %s153_s5 = sand.u32 (%p737_p3), 1, %s639_s14  }
  0x1b   : > { %s489_s6 = smul.u32 (%p737_p3), 10, %s655_s18  ;;  %s850_s0 = sld [smem:[#allocation6_spill]] (%p737_p3) }
  0x1c   : > { %s488_s7 = smul.u32 (%p737_p3), 40, %s153_s5 }
  0x1d   : > { %s157_s8 = sadd.s32 (%p737_p3), %s651_s17, %s489_s6 }
  0x1e   : > { %s452_s9 = sshll.u32 (%p737_p3), %s157_s8, 3  ;;  %s155_s21 = scalar_lea.vmem (%p737_p3), [#allocation2], %s488_s7 }
  0x21   : > { %s159_s20 = scalar_lea.vmem %s850_s0, %s452_s9 }
  0x22   : > { %v195_v0 = vld [vmem:[%s159_s20] sm:$0xff]  ;;  %v197_v1 = vld [vmem:[%s159_s20 + $0x10] sm:$0xff] }
  0x23   : > { %v199_v2 = vld [vmem:[%s159_s20 + $0x20] sm:$0xff]  ;;  %196 = vst [vmem:[%s155_s21] sm:$0xff] %v195_v0  ;;  %198 = vst [vmem:[%s155_s21 + $0x8] sm:$0xff] %v197_v1  ;;  %v201_v3 = vld [vmem:[%s159_s20 + $0x30] sm:$0xff] }
  0x24   : > { %200 = vst [vmem:[%s155_s21 + $0x10] sm:$0xff] %v199_v2  ;;  %v203_v4 = vld [vmem:[%s159_s20 + $0x40] sm:$0xff]  ;;  %202 = vst [vmem:[%s155_s21 + $0x18] sm:$0xff] %v201_v3 }
  0x25   : > { %204 = vst [vmem:[%s155_s21 + $0x20] sm:$0xff] %v203_v4 }
  0x26 PF: > { %p453_p12 = scmp.ge.s32.totalorder %s659_s19, 1  ;;  %p216_p13 = scmp.lt.s32.totalorder %s659_s19, 5 }
  0x28   : > { %p217_p0 = pnand %p453_p12, %p216_p13 }
  0x29   : > { %s771_s24 = sand.u32 (!%p217_p0), 1, %s635_s13   ;;  %v661_v5 = vmov (!%p217_p0), 0.0|0.0   ;;  %vm662_vm0 = vmmov (!%p217_p0), 0   ;;  %v663_v6 = vmov (!%p217_p0), 0.0   ;;  %vm265_vm1 = vcmask (!%p217_p0), 1043456   ;;  %v254_v14 = vld [vmem:[%s843_s1] sm:$0xff] (!%p217_p0) }
  0x2a   : > { %220 = sbr.rel (%p217_p0) target bundleno = 286 (0x11e), region = 66  ;;  %482 = vmatprep.subr.bf16.mxu0 (!%p217_p0), %v661_v5  ;;  %479 = vmatprep.mubr.msk.f32.mxu0 (!%p217_p0), %vm662_vm0, %v663_v6  ;;  %vm261_vm2 = vcmask (!%p217_p0), 293888   ;;  %p250_p1 = scmp.lt.s32.totalorder (!%p217_p0), %s643_s15, 1 }
  0x2b   : > { %s490_s25 = smul.u32 (!%p217_p0), 40, %s771_s24  ;;  %s454_s6 = sshll.u32 (!%p217_p0), %s771_s24, 3 }
  0x2c   : > { %s459_s8 = sshll.u32 (!%p217_p0), %s647_s16, 1  ;;  %s341_s16 = scalar_lea.sflag (!%p217_p0), [#allocation4], %s771_s24 }
  0x2d   : > { %s225_s28 = scalar_lea.vmem (!%p217_p0), [#allocation2], %s490_s25  ;;  %s352_s20 = sadd.s32 (!%p217_p0), %s643_s15, %s459_s8 }
  0x2e   : > { %v255_v7 = vld [vmem:[%s225_s28] sm:$0xff] (!%p217_p0)  ;;  %v256_v8 = vld [vmem:[%s225_s28 + $0x8] sm:$0xff] (!%p217_p0)  ;;  %v257_v9 = vld [vmem:[%s225_s28 + $0x10] sm:$0xff] (!%p217_p0)  ;;  %s460_s21 = sshll.u32 (!%p217_p0), %s352_s20, 7  ;;  %s249_s25 = scalar_lea.vmem (!%p217_p0), [#allocation3], %s454_s6 }
  0x2f   : > { %v483_v10 = vpack.c.bf16 (!%p217_p0), %v256_v8, %v255_v7  ;;  %v258_v11 = vld [vmem:[%s225_s28 + $0x18] sm:$0xff] (!%p217_p0)  ;;  %v259_v13 = vld [vmem:[%s225_s28 + $0x20] sm:$0xf] (!%p217_p0)  ;;  %s356_s28 = sshll.u32 (!%p217_p0), %s249_s25, 4  ;;  %s788_s0 = scalar_lea.hbm (!%p217_p0), %s845_s3, %s460_s21  ;;  %s790_s28 = int_to_ptr.vmem [resolvable:$true] %s356_s28 }
  0x30   : > { %v486_v12 = vpack.c.bf16 (!%p217_p0), %v258_v11, %v257_v9 }
  0x31   : > { %484 = vmatpush3.bf16.msra.mxu0 %v483_v10  ;;  %s251_s5 = scalar_select %p250_p1, %s643_s15, 1 }
  0x32   : > { %485 = vmatprep.subr.bf16.mxu0 %v661_v5  ;;  %s565_s15 = scalar_lea.vmem %s790_s28, 128 }
  0x33   : > { %s455_s7 = sshll.u32 %s251_s5, 3  ;;  %p566_p2 = scmp.ne.s32.totalorder %s790_s28, %s565_s15 }
  0x34   : > { %s253_s11 = scalar_lea.vmem %s844_s2, %s455_s7  ;;  %s664_s5 = smov [#allocation3]  }
  0x35   : > { %487 = vmatpush3.bf16.msra.mxu0 %v486_v12  ;;  %v260_v15 = vld [vmem:[%s253_s11] sm:$0xff]  ;;  %p567_p3 = pnand %p566_p2, %p745_p8  ;;  %s569_s6 = sshll.u32 %s664_s5, 4  ;;  %s570_s6 = int_to_ptr.vmem [resolvable:$false] %s569_s6 }
  0x36   : > { %477 = vmatprep.subr.mxu0 %v663_v6  ;;  %s571_s7 = scalar_lea.vmem %s570_s6, 256  ;;  %p572_p5 = scmp.lt.s32.totalorder %s790_s28, %s570_s6 }
  0x37   : > { %p568_p4 = pneg %p567_p3  ;;  %p573_p6 = scmp.lt.s32.totalorder %s571_s7, %s565_s15 }
  0x39   : > { %478 = vmatpush3.msk.msra.mxu0 %vm265_vm1, %v259_v13  ;;  %p574_p7 = por %p573_p6, %p572_p5 }
  0x3a   : > { %480 = vmatmul.mubr.msk.f32.vlgmr.msra.gmra.mrb[0].mxu0 %vm261_vm2, %v254_v14 }
  0x3b   : > { %p575_p10 = pnand %p574_p7, %p568_p4 }
 0x10d   : > { %v335_v16 = vpop.f32.mrb[0].mxu0 }
 0x10e   : > { %v336_v17 = vadd.f32 %v335_v16, %v260_v15  ;;  %v481_v18 = vpop.f32.mrb[1].mxu0 }
 0x110   : > { %339 = vst [vmem:[%s249_s25] sm:$0xff] %v336_v17 }
 0x111   : > { %578 = shalt.err (!%p575_p10)
}
 0x112   : > { %s579_s24 = scalar_lea.hbm %s788_s0, 128  ;;  %s583_s10 = scalar_lea.hbm %s845_s3, 512 }
 0x113   : > { %p580_p11 = scmp.ne.s32.totalorder %s788_s0, %s579_s24  ;;  %p584_p0 = scmp.lt.u32.totalorder %s788_s0, %s845_s3 }
 0x114   : > { %p585_p1 = scmp.lt.u32.totalorder %s583_s10, %s579_s24  ;;  %p587_p3 = scmp.lt.u32.totalorder %s579_s24, %s788_s0 }
 0x115   : > { %p581_p12 = pnand %p580_p11, %p745_p8 }
 0x116   : > { %p586_p2 = por %p585_p1, %p584_p0 }
 0x117   : > { %p582_p13 = pneg %p581_p12 }
 0x118   : > { %p588_p4 = por %p587_p3, %p586_p2 }
 0x11a   : > { %p589_p5 = pnand %p588_p4, %p582_p13 }
 0x11c   : > { %592 = shalt.err (!%p589_p5)
}
 0x11d   : > { %491 = dma.vmem_to_hbm [thread:$0]  (%p745_p8), %s790_s28, 128, %s788_s0, %s341_s16  }
 0x11e PF: > { %p497_p6 = scmp.ge.s32.totalorder %s659_s19, 2  ;;  %s368_s21 = sand.u32 1, %s631_s12  }
 0x11f   : > { %s369_s25 = scalar_lea.sflag [#allocation4], %s368_s21 }
 0x120   : > { %p494_p7 = pnand %p497_p6, %p749_p9 }
 0x122   : > { %626 = dma.done.wait (!%p494_p7), %s369_s25, 128  }
 0x123   : > { %628 = vsyncadd (!%p494_p7), %s369_s25, 4294967168  ;;  %s16_s19 = sadd.s32 1, %s659_s19   ;;  %s851_s12 = smov %s635_s13 }
 0x124   : > { %p13_p10 = scmp.ge.s32.totalorder %s16_s19, 6   ;;  %s852_s13 = smov %s639_s14 }
 0x125   : > { %s853_s14 = smov %s757_s4  ;;  %s854_s15 = smov %s651_s17 }
 0x126   : > { %s855_s16 = smov %s655_s18  ;;  %s856_s17 = smov %s859_s22 }
 0x127   : > { %s857_s18 = smov %s863_s23  ;;  %15 = sbr.rel (!%p13_p10) target bundleno = 7 (0x7), region = 113 }
 0x12e   :  { %374 = vsyncpa [#allocation4], 1 }
 0x12f   :  { %376 = vsyncpa [#allocation4 + $0x1], 1 }

</bundles_post_ra>
